<compile_context>
chip_gen: v5e
topology: v5e:2x2
jax: 0.10.0
libtpu: 0.0.40
codegen_flags: <defaults>
</compile_context>

<pallas_src>
import math

import jax
import jax.numpy as jnp
from jax.experimental import pallas as pl
from jax.experimental.pallas import tpu as pltpu

LOG_STD_MIN = -10.0
LOG_STD_MAX = 2.0
LOG_STD_MID = 0.5 * (LOG_STD_MIN + LOG_STD_MAX)    # -4.0
LOG_STD_HALF = 0.5 * (LOG_STD_MAX - LOG_STD_MIN)   # 6.0


def _round_up(x, m):
    return -(-x // m) * m


def _head_layout(action_dims):
    """Returns (split, head_width).

    mean pre-activations live in lanes [0:action_dims],
    std  pre-activations live in lanes [split:split+action_dims].
    For action_dims <= 64 both heads share one 128-lane column (packed);
    otherwise each head gets its own 128-multiple half (vreg-aligned split).
    """
    if action_dims <= 64:
        return 64, 128
    half = _round_up(action_dims, 128)
    return half, 2 * half


def _make_actor_kernel(split):
    def actor_kernel(x_ref, w1_ref, b1_ref, w2_ref, b2_ref, w3_ref, b3_ref, out_ref):
        # fc1 / fc2: bf16 MXU matmuls, f32 accumulation; bias add + ReLU in f32.
        x_bf = x_ref[...].astype(jnp.bfloat16)
        h1 = jnp.dot(x_bf, w1_ref[...], preferred_element_type=jnp.float32) + b1_ref[...]
        h1 = jnp.maximum(h1, 0.0)
        h2 = jnp.dot(h1.astype(jnp.bfloat16), w2_ref[...],
                     preferred_element_type=jnp.float32) + b2_ref[...]
        h2 = jnp.maximum(h2, 0.0)

        # Fused head: mean and log_std pre-activations from a single matmul.
        head = jnp.dot(h2.astype(jnp.bfloat16), w3_ref[...],
                       preferred_element_type=jnp.float32) + b3_ref[...]

        if split % 128 == 0:
            # vreg-aligned column split: cheap static slices, EUP only on std lanes.
            out_ref[:, :split] = head[:, :split]
            log_std = LOG_STD_MID + LOG_STD_HALF * jnp.tanh(head[:, split:])
            out_ref[:, split:] = jnp.exp(log_std)
        else:
            # mean and std packed in one 128-lane vreg column: lane select (VPU).
            lane = jax.lax.broadcasted_iota(jnp.int32, head.shape, 1)
            sd = jnp.exp(LOG_STD_MID + LOG_STD_HALF * jnp.tanh(head))
            out_ref[...] = jnp.where(lane >= split, sd, head)

    return actor_kernel


def _choose_tile_b(B, max_tile=2048):
    """Large tiles (low grid-step overhead); >=2 steps at big B so v7x's 2 TCs are used."""
    b8 = _round_up(B, 8)
    if b8 <= 256:
        return b8                                   # tiny batch: single tile
    return min(_round_up(-(-b8 // 2), 8), max_tile)  # ~half the batch, capped


def _vmem_limit_bytes(tile_b, in_dim, h_pad, head_w):
    weights = (in_dim * h_pad + h_pad * h_pad + h_pad * head_w) * 2 \
              + (2 * h_pad + head_w) * 4                     # resident bf16 W + f32 b
    streamed = 2 * tile_b * (in_dim + head_w) * 4            # double-buffered x / out tiles
    inter = tile_b * h_pad * 12 + tile_b * head_w * 4        # h1/h2 f32 + bf16 casts + head
    est = int(1.5 * (weights + streamed + inter)) + (4 << 20)
    return min(max(est, 32 << 20), 48 << 20)                 # stay inside v7x's 64 MiB VMEM


def actor_forward(s, params, action_dims, *, max_tile_b=2048):
    """Full ActorContinuous forward in one batch-tiled Pallas kernel."""
    w1, b1, w2, b2, w3, b3 = params
    B, in_dim = s.shape
    h_pad = w1.shape[1]
    head_w = w3.shape[1]
    split, expect_w = _head_layout(action_dims)
    assert head_w == expect_w, (head_w, expect_w)

    tile_b = _choose_tile_b(B, max_tile_b)
    n_steps = pl.cdiv(B, tile_b)
    b_pad = n_steps * tile_b
    if b_pad != B:
        # pad the batch so every block is in-bounds (no ragged OOB reads)
        s = jnp.pad(s, ((0, b_pad - B), (0, 0)))

    # weights/biases: constant index_map -> VMEM-resident; single-buffered.
    const = lambda arr: pl.BlockSpec(arr.shape, lambda i: (0, 0),
                                     pipeline_mode=pl.Buffered(1))

    out = pl.pallas_call(
        _make_actor_kernel(split),
        out_shape=jax.ShapeDtypeStruct((b_pad, head_w), jnp.float32),
        grid=(n_steps,),
        in_specs=[pl.BlockSpec((tile_b, in_dim), lambda i: (i, 0)),
                  const(w1), const(b1),
                  const(w2), const(b2),
                  const(w3), const(b3)],
        out_specs=pl.BlockSpec((tile_b, head_w), lambda i: (i, 0)),
        compiler_params=pltpu.CompilerParams(
            dimension_semantics=("parallel",),
            vmem_limit_bytes=_vmem_limit_bytes(tile_b, in_dim, h_pad, head_w),
        ),
    )(s, w1, b1, w2, b2, w3, b3)

    m = out[:B, :action_dims]
    sd = out[:B, split:split + action_dims]
    return m, sd


def _xavier_uniform(key, fan_in, fan_out, gain=1.0):
    bound = gain * math.sqrt(6.0 / (fan_in + fan_out))
    # stored as (in, out) — kernel computes x @ W (== torch x @ W.T)
    return jax.random.uniform(key, (fan_in, fan_out), jnp.float32, -bound, bound)


def init_actor_params(key, input_dims, action_dims, hidden_dims=400):
    """Matches the PyTorch init (xavier_uniform_ weights, bias 0.01), laid out for the
    kernel: hidden width zero-padded to a 128 multiple, the two heads of
    Linear(hidden, 2*action_dims) fused/packed into one lane-dense matrix."""
    k1, k2, k3 = jax.random.split(key, 3)
    h_pad = _round_up(hidden_dims, 128)
    split, head_w = _head_layout(action_dims)

    w1 = _xavier_uniform(k1, input_dims, hidden_dims)
    w2 = _xavier_uniform(k2, hidden_dims, hidden_dims)
    w3 = _xavier_uniform(k3, hidden_dims, 2 * action_dims)  # torch chunk order: [mean | log_std]

    # Hidden padding: ZERO weight cols/rows and ZERO bias pad so padded lanes stay exactly 0
    # through ReLU and contribute nothing downstream (bit-equivalent to the unpadded net).
    w1p = jnp.zeros((input_dims, h_pad), jnp.float32).at[:, :hidden_dims].set(w1)
    b1p = jnp.zeros((1, h_pad), jnp.float32).at[:, :hidden_dims].set(0.01)
    w2p = jnp.zeros((h_pad, h_pad), jnp.float32).at[:hidden_dims, :hidden_dims].set(w2)
    b2p = jnp.zeros((1, h_pad), jnp.float32).at[:, :hidden_dims].set(0.01)

    # Fused head: mean -> lanes [0:A], std -> lanes [split:split+A], rest zero.
    w3p = jnp.zeros((h_pad, head_w), jnp.float32)
    w3p = w3p.at[:hidden_dims, :action_dims].set(w3[:, :action_dims])
    w3p = w3p.at[:hidden_dims, split:split + action_dims].set(w3[:, action_dims:])
    b3p = jnp.zeros((1, head_w), jnp.float32)
    b3p = b3p.at[:, :action_dims].set(0.01)
    b3p = b3p.at[:, split:split + action_dims].set(0.01)

    bf = jnp.bfloat16  # weights bf16 for the MXU path; biases stay f32
    return (w1p.astype(bf), b1p, w2p.astype(bf), b2p, w3p.astype(bf), b3p)


def actor_ref(s, params, action_dims):
    """Plain-JAX reference with the identical bf16-matmul / f32-epilogue path."""
    w1, b1, w2, b2, w3, b3 = params
    split, _ = _head_layout(action_dims)
    h1 = jnp.maximum(
        jnp.dot(s.astype(jnp.bfloat16), w1, preferred_element_type=jnp.float32) + b1, 0.0)
    h2 = jnp.maximum(
        jnp.dot(h1.astype(jnp.bfloat16), w2, preferred_element_type=jnp.float32) + b2, 0.0)
    head = jnp.dot(h2.astype(jnp.bfloat16), w3, preferred_element_type=jnp.float32) + b3
    m = head[:, :action_dims]
    log_std = jnp.tanh(head[:, split:split + action_dims])
    log_std = LOG_STD_MIN + 0.5 * (LOG_STD_MAX - LOG_STD_MIN) * (log_std + 1.0)
    return m, jnp.exp(log_std)


if __name__ == "__main__":
    # small shapes consistent with the module
    batch, input_dims, action_dims, hidden_dims = 8, 12, 4, 32

    key = jax.random.PRNGKey(0)
    ks, kp = jax.random.split(key, 2)
    s = jax.random.normal(ks, (batch, input_dims), jnp.float32)
    params = init_actor_params(kp, input_dims, action_dims, hidden_dims)

    m, sd = actor_forward(s, params, action_dims)
    m = jax.block_until_ready(m)
    sd = jax.block_until_ready(sd)

    m_ref, sd_ref = actor_ref(s, params, action_dims)

    assert m.shape == (batch, action_dims), m.shape
    assert sd.shape == (batch, action_dims), sd.shape
    assert jnp.allclose(m, m_ref, atol=1e-3, rtol=1e-3), float(jnp.max(jnp.abs(m - m_ref)))
    assert jnp.allclose(sd, sd_ref, atol=1e-3, rtol=1e-3), float(jnp.max(jnp.abs(sd - sd_ref)))
    assert bool(jnp.all(sd > 0.0))

    print("KERNEL_OK")
</pallas_src>

<mosaic_0001>
module attributes {stable_mosaic.version = 11 : i64} {
  func.func @actor_kernel(%arg0: i32, %arg1: memref<8x12xf32, #tpu.memory_space<vmem>>, %arg2: memref<12x128xbf16, #tpu.memory_space<vmem>>, %arg3: memref<1x128xf32, #tpu.memory_space<vmem>>, %arg4: memref<128x128xbf16, #tpu.memory_space<vmem>>, %arg5: memref<1x128xf32, #tpu.memory_space<vmem>>, %arg6: memref<128x128xbf16, #tpu.memory_space<vmem>>, %arg7: memref<1x128xf32, #tpu.memory_space<vmem>>, %arg8: memref<8x128xf32, #tpu.memory_space<vmem>>) attributes {dimension_semantics = [#tpu.dimension_semantics<parallel>], iteration_bounds = array<i64: 1>, scalar_prefetch = 0 : i64, scratch_operands = 0 : i64, tpu.core_type = #tpu.core_type<tc>, window_params = [{transform_indices = @transform_0, window_bounds = array<i64: 8, 12>}, {pipeline_mode = #tpu.pipeline_mode<synchronous>, transform_indices = @transform_1, window_bounds = array<i64: 12, 128>}, {pipeline_mode = #tpu.pipeline_mode<synchronous>, transform_indices = @transform_2, window_bounds = array<i64: 1, 128>}, {pipeline_mode = #tpu.pipeline_mode<synchronous>, transform_indices = @transform_3, window_bounds = array<i64: 128, 128>}, {pipeline_mode = #tpu.pipeline_mode<synchronous>, transform_indices = @transform_4, window_bounds = array<i64: 1, 128>}, {pipeline_mode = #tpu.pipeline_mode<synchronous>, transform_indices = @transform_5, window_bounds = array<i64: 128, 128>}, {pipeline_mode = #tpu.pipeline_mode<synchronous>, transform_indices = @transform_6, window_bounds = array<i64: 1, 128>}, {transform_indices = @transform_7, window_bounds = array<i64: 8, 128>}]} {
    %c0 = arith.constant 0 : index
    %c0_0 = arith.constant 0 : index
    %0 = vector.load %arg1[%c0, %c0_0] : memref<8x12xf32, #tpu.memory_space<vmem>>, vector<8x12xf32>
    %1 = arith.truncf %0 : vector<8x12xf32> to vector<8x12xbf16>
    %c0_1 = arith.constant 0 : index
    %c0_2 = arith.constant 0 : index
    %2 = vector.load %arg2[%c0_1, %c0_2] : memref<12x128xbf16, #tpu.memory_space<vmem>>, vector<12x128xbf16>
    %cst = arith.constant dense<0.000000e+00> : vector<8x128xf32>
    %3 = tpu.matmul %1, %2, %cst {dimension_numbers = #tpu.dot_dimension_numbers<[1], [0], [0], [1], [0, 0, 1, 1], [], []>} : vector<8x12xbf16>, vector<12x128xbf16>, vector<8x128xf32> -> vector<8x128xf32>
    %c0_3 = arith.constant 0 : index
    %c0_4 = arith.constant 0 : index
    %4 = vector.load %arg3[%c0_3, %c0_4] : memref<1x128xf32, #tpu.memory_space<vmem>>, vector<1x128xf32>
    %5 = vector.broadcast %4 : vector<1x128xf32> to vector<8x128xf32>
    %6 = arith.addf %3, %5 : vector<8x128xf32>
    %cst_5 = arith.constant 0.000000e+00 : f32
    %7 = vector.broadcast %cst_5 : f32 to vector<8x128xf32>
    %8 = arith.maximumf %6, %7 : vector<8x128xf32>
    %9 = arith.truncf %8 : vector<8x128xf32> to vector<8x128xbf16>
    %c0_6 = arith.constant 0 : index
    %c0_7 = arith.constant 0 : index
    %10 = vector.load %arg4[%c0_6, %c0_7] : memref<128x128xbf16, #tpu.memory_space<vmem>>, vector<128x128xbf16>
    %cst_8 = arith.constant dense<0.000000e+00> : vector<8x128xf32>
    %11 = tpu.matmul %9, %10, %cst_8 {dimension_numbers = #tpu.dot_dimension_numbers<[1], [0], [0], [1], [0, 0, 1, 1], [], []>} : vector<8x128xbf16>, vector<128x128xbf16>, vector<8x128xf32> -> vector<8x128xf32>
    %c0_9 = arith.constant 0 : index
    %c0_10 = arith.constant 0 : index
    %12 = vector.load %arg5[%c0_9, %c0_10] : memref<1x128xf32, #tpu.memory_space<vmem>>, vector<1x128xf32>
    %13 = vector.broadcast %12 : vector<1x128xf32> to vector<8x128xf32>
    %14 = arith.addf %11, %13 : vector<8x128xf32>
    %cst_11 = arith.constant 0.000000e+00 : f32
    %15 = vector.broadcast %cst_11 : f32 to vector<8x128xf32>
    %16 = arith.maximumf %14, %15 : vector<8x128xf32>
    %17 = arith.truncf %16 : vector<8x128xf32> to vector<8x128xbf16>
    %c0_12 = arith.constant 0 : index
    %c0_13 = arith.constant 0 : index
    %18 = vector.load %arg6[%c0_12, %c0_13] : memref<128x128xbf16, #tpu.memory_space<vmem>>, vector<128x128xbf16>
    %cst_14 = arith.constant dense<0.000000e+00> : vector<8x128xf32>
    %19 = tpu.matmul %17, %18, %cst_14 {dimension_numbers = #tpu.dot_dimension_numbers<[1], [0], [0], [1], [0, 0, 1, 1], [], []>} : vector<8x128xbf16>, vector<128x128xbf16>, vector<8x128xf32> -> vector<8x128xf32>
    %c0_15 = arith.constant 0 : index
    %c0_16 = arith.constant 0 : index
    %20 = vector.load %arg7[%c0_15, %c0_16] : memref<1x128xf32, #tpu.memory_space<vmem>>, vector<1x128xf32>
    %21 = vector.broadcast %20 : vector<1x128xf32> to vector<8x128xf32>
    %22 = arith.addf %19, %21 : vector<8x128xf32>
    %23 = tpu.iota {dimensions = array<i32: 1>} : vector<8x128xi32>
    %24 = math.tanh %22 : vector<8x128xf32>
    %cst_17 = arith.constant 6.000000e+00 : f32
    %25 = vector.broadcast %cst_17 : f32 to vector<8x128xf32>
    %26 = arith.mulf %25, %24 : vector<8x128xf32>
    %cst_18 = arith.constant -4.000000e+00 : f32
    %27 = vector.broadcast %cst_18 : f32 to vector<8x128xf32>
    %28 = arith.addf %27, %26 : vector<8x128xf32>
    %29 = math.exp %28 : vector<8x128xf32>
    %c64_i32 = arith.constant 64 : i32
    %30 = vector.broadcast %c64_i32 : i32 to vector<8x128xi32>
    %31 = arith.cmpi sge, %23, %30 : vector<8x128xi32>
    %32 = arith.select %31, %29, %22 : vector<8x128xi1>, vector<8x128xf32>
    %c0_19 = arith.constant 0 : index
    %c0_20 = arith.constant 0 : index
    %33 = vector.load %arg8[%c0_19, %c0_20] : memref<8x128xf32, #tpu.memory_space<vmem>>, vector<8x128xf32>
    tpu.vector_store %arg8[%c0_19, %c0_20], %32 {strides = array<i32>} : memref<8x128xf32, #tpu.memory_space<vmem>>, vector<8x128xf32>,
    return
  }
  func.func @transform_0(%arg0: i32) -> (i32, i32) {
    %c0_i32 = arith.constant 0 : i32
    %c0_i32_0 = arith.constant 0 : i32
    return %arg0, %c0_i32 : i32, i32
  }
  func.func @transform_1(%arg0: i32) -> (i32, i32) {
    %c0_i32 = arith.constant 0 : i32
    %c0_i32_0 = arith.constant 0 : i32
    %c0_i32_1 = arith.constant 0 : i32
    return %c0_i32, %c0_i32_0 : i32, i32
  }
  func.func @transform_2(%arg0: i32) -> (i32, i32) {
    %c0_i32 = arith.constant 0 : i32
    %c0_i32_0 = arith.constant 0 : i32
    %c0_i32_1 = arith.constant 0 : i32
    return %c0_i32, %c0_i32_0 : i32, i32
  }
  func.func @transform_3(%arg0: i32) -> (i32, i32) {
    %c0_i32 = arith.constant 0 : i32
    %c0_i32_0 = arith.constant 0 : i32
    %c0_i32_1 = arith.constant 0 : i32
    return %c0_i32, %c0_i32_0 : i32, i32
  }
  func.func @transform_4(%arg0: i32) -> (i32, i32) {
    %c0_i32 = arith.constant 0 : i32
    %c0_i32_0 = arith.constant 0 : i32
    %c0_i32_1 = arith.constant 0 : i32
    return %c0_i32, %c0_i32_0 : i32, i32
  }
  func.func @transform_5(%arg0: i32) -> (i32, i32) {
    %c0_i32 = arith.constant 0 : i32
    %c0_i32_0 = arith.constant 0 : i32
    %c0_i32_1 = arith.constant 0 : i32
    return %c0_i32, %c0_i32_0 : i32, i32
  }
  func.func @transform_6(%arg0: i32) -> (i32, i32) {
    %c0_i32 = arith.constant 0 : i32
    %c0_i32_0 = arith.constant 0 : i32
    %c0_i32_1 = arith.constant 0 : i32
    return %c0_i32, %c0_i32_0 : i32, i32
  }
  func.func @transform_7(%arg0: i32) -> (i32, i32) {
    %c0_i32 = arith.constant 0 : i32
    %c0_i32_0 = arith.constant 0 : i32
    return %arg0, %c0_i32 : i32, i32
  }
}

</mosaic_0001>

<bundles_post_ra>
// kernel: tpu_custom_call.1
= control target key start
LH: loop header
LB: loop body
LE: loop exit
PB: predicated region body
PF: predicated region fallthrough
CT: control target
= control target key end

     0   :  { %12 = vsyncpa [#allocation3], 0  ;;  %s617_s0 = inlined_call_operand.hbm [shape: f32[8,12], index: 0, kind: input, shape index: {}]   ;;  %s618_s1 = inlined_call_operand.hbm [shape: bf16[12,128], index: 1, kind: input, shape index: {}]   ;;  %s619_s2 = inlined_call_operand.vmem [shape: f32[1,128], index: 2, kind: input, shape index: {}]   ;;  %s620_s3 = inlined_call_operand.hbm [shape: bf16[128,128], index: 3, kind: input, shape index: {}]   ;;  %s621_s4 = inlined_call_operand.vmem [shape: f32[1,128], index: 4, kind: input, shape index: {}]   ;;  %s622_s5 = inlined_call_operand.hbm [shape: bf16[128,128], index: 5, kind: input, shape index: {}]   ;;  %s623_s6 = inlined_call_operand.vmem [shape: f32[1,128], index: 6, kind: input, shape index: {}]   ;;  %s624_s7 = inlined_call_operand.hbm [shape: f32[8,128], index: 7, kind: output, shape index: {}]  }
   0x1   :  { %13 = vsyncpa [#allocation6], 0 }
   0x2   :  { %14 = vsyncpa [#allocation9], 0  ;;  %s31_s26 = sshll.u32 %s618_s1, 4  ;;  %s32_s26 = int_to_ptr.hbm [resolvable:$true] %s31_s26 }
   0x3   :  { %15 = vsyncpa [#allocation4], 0  ;;  %s546_s27 = smov [#allocation5]   ;;  %s21_s8 = sshll.u32 %s617_s0, 4  ;;  %s22_s8 = int_to_ptr.hbm [resolvable:$true] %s21_s8 }
   0x4   :  { %s33_s28 = sshll.u32 %s546_s27, 4  ;;  %s547_s9 = smov 64   ;;  %s34_s28 = int_to_ptr.vmem [resolvable:$true] %s33_s28 }
   0x5   :  { %s548_s10 = smov 4   ;;  %s549_s11 = smov [#allocation2]  }
   0x6   :  { %39 = dma.hbm_to_vmem [thread:$0]  %s32_s26, 128, %s34_s28, [#allocation6], %s547_s9, %s547_s9, %s548_s10  }
   0x7   :  { %s23_s12 = sshll.u32 %s549_s11, 4  ;;  %s46_s15 = sshll.u32 %s620_s3, 4  ;;  %s24_s12 = int_to_ptr.vmem [resolvable:$true] %s23_s12  ;;  %s47_s15 = int_to_ptr.hbm [resolvable:$true] %s46_s15 }
   0x8   :  { %26 = dma.hbm_to_vmem [thread:$0]  %s22_s8, 128, %s24_s12, [#allocation3]  }
   0x9   :  { %s61_s17 = sshll.u32 %s622_s5, 4  ;;  %s550_s18 = smov [#allocation7]   ;;  %s62_s17 = int_to_ptr.hbm [resolvable:$true] %s61_s17 }
   0xa   :  { %s48_s19 = sshll.u32 %s550_s18, 4  ;;  %s551_s0 = smov [#allocation8]   ;;  %s49_s19 = int_to_ptr.vmem [resolvable:$true] %s48_s19 }
   0xb   :  { %54 = dma.hbm_to_vmem [thread:$0]  %s47_s15, 1024, %s49_s19, [#allocation6], %s547_s9, %s547_s9, %s548_s10  }
   0xc   :  { %s63_s20 = sshll.u32 %s551_s0, 4  ;;  %s64_s20 = int_to_ptr.vmem [resolvable:$true] %s63_s20 }
   0xd   :  { %69 = dma.hbm_to_vmem [thread:$0]  %s62_s17, 1024, %s64_s20, [#allocation9], %s547_s9, %s547_s9, %s548_s10  }
   0xe   :  { %538 = dma.done.wait [#allocation3], 128  }
   0xf   :  { %539 = vsyncadd [#allocation3], 4294967168 }
  0x10   :  { %540 = dma.done.wait [#allocation6], 1152  }
  0x11   :  { %541 = vsyncadd [#allocation6], 4294966144 }
  0x12   :  { %542 = dma.done.wait [#allocation9], 1024  }
  0x13   :  { %543 = vsyncadd [#allocation9], 4294966272  ;;  %v320_v0 = vld [vmem:[#allocation5] sm:$0xf]  ;;  %v387_v1 = vld [vmem:[#allocation5] sm:$0x30]  ;;  %v289_v41 = vlaneseq }
  0x14   :  { %vm106_vm0 = vcmask 1045504   ;;  %v89_v2 = vld [vmem:[#allocation2] sm:$0xff]  ;;  %v321_v3 = vor.u32 %v387_v1, %v320_v0  ;;  %v395_v4 = vld [vmem:[#allocation7 + $0x38] sm:$0xff]  ;;  %vm102_vm1 = vcmask 97280   ;;  %v393_v8 = vld [vmem:[#allocation7 + $0x28] sm:$0xff]  ;;  %s306_s27 = sshll.u32 %s624_s7, 4  ;;  %s307_s27 = int_to_ptr.hbm [resolvable:$true] %s306_s27 }
  0x15   :  { %v90_v6 = vpack.c.bf16 %v89_v2, %v89_v2  ;;  %193 = vmatpush.bf16.msra.mxu1 %v395_v4  ;;  %v394_v7 = vld [vmem:[#allocation7 + $0x30] sm:$0xff]  ;;  %v392_v9 = vld [vmem:[#allocation7 + $0x20] sm:$0xff]  ;;  %v391_v10 = vld [vmem:[#allocation7 + $0x18] sm:$0xff]  ;;  %v290_v43 = vand.u32 127, %v289_v41 }
  0x16   :  { %v108_v5 = vsel %vm106_vm0, %v321_v3, 0  ;;  %v390_v11 = vld [vmem:[#allocation7 + $0x10] sm:$0xff]  ;;  %v389_v12 = vld [vmem:[#allocation7 + $0x8] sm:$0xff]  ;;  %v388_v13 = vld [vmem:[#allocation7] sm:$0xff] }
  0x17   :  { %117 = vmatpush.bf16.msra.mxu0 %v108_v5  ;;  %v403_v14 = vld [vmem:[#allocation8 + $0x38] sm:$0xff]  ;;  %v402_v15 = vld [vmem:[#allocation8 + $0x30] sm:$0xff]  ;;  %v401_v16 = vld [vmem:[#allocation8 + $0x28] sm:$0xff]  ;;  %vm296_vm2 = vcmp.ge.s32.totalorder %v290_v43, 64 }
  0x18   :  { %276 = vmatpush.bf16.msra.mxu2 %v403_v14  ;;  %v400_v17 = vld [vmem:[#allocation8 + $0x20] sm:$0xff]  ;;  %v399_v18 = vld [vmem:[#allocation8 + $0x18] sm:$0xff]  ;;  %v398_v19 = vld [vmem:[#allocation8 + $0x10] sm:$0xff] }
  0x19   :  { %194 = vmatpush.bf16.msra.mxu1 %v394_v7  ;;  %v411_v20 = vld [vmem:[%s619_s2] ss:$0 sm:$0xff]  ;;  %v397_v26 = vld [vmem:[#allocation8 + $0x8] sm:$0xff]  ;;  %v396_v27 = vld [vmem:[#allocation8] sm:$0xff] }
  0x1a   :  { %322 = vmatmul.msk.bf16.vlgmr.msra.gmra.mxu0 %vm102_vm1, %v90_v6  ;;  %v412_v28 = vld [vmem:[%s621_s4] ss:$0 sm:$0xff]  ;;  %s552_s4 = smov [#allocation10]  }
  0x1b   :  { %v413_v34 = vld [vmem:[%s623_s6] ss:$0 sm:$0xff]  ;;  %s304_s24 = sshll.u32 %s552_s4, 4  ;;  %s305_s24 = int_to_ptr.vmem [resolvable:$true] %s304_s24 }
  0x1c   :  { %277 = vmatpush.bf16.msra.mxu2 %v402_v15 }
  0x1d   :  { %195 = vmatpush.bf16.msra.mxu1 %v393_v8 }
  0x20   :  { %278 = vmatpush.bf16.msra.mxu2 %v401_v16 }
  0x21   :  { %196 = vmatpush.bf16.msra.mxu1 %v392_v9 }
  0x24   :  { %279 = vmatpush.bf16.msra.mxu2 %v400_v17 }
  0x25   :  { %197 = vmatpush.bf16.msra.mxu1 %v391_v10 }
  0x28   :  { %280 = vmatpush.bf16.msra.mxu2 %v399_v18 }
  0x29   :  { %198 = vmatpush.bf16.msra.mxu1 %v390_v11 }
  0x2c   :  { %281 = vmatpush.bf16.msra.mxu2 %v398_v19 }
  0x2d   :  { %199 = vmatpush.bf16.msra.mxu1 %v389_v12 }
  0x30   :  { %282 = vmatpush.bf16.msra.mxu2 %v397_v26 }
  0x31   :  { %200 = vmatpush.bf16.msra.mxu1 %v388_v13 }
  0x34   :  { %283 = vmatpush.bf16.msra.mxu2 %v396_v27 }
  0x97   :  { %v119_v21 = vpop.f32.mrf.mxu0 }
  0x98   :  { %v120_v22 = vadd.f32 %v411_v20, %v119_v21 }
  0x9a   :  { %v123_v23 = vmax.f32 %v120_v22, 0.0 }
  0x9c   :  { %v124_v24 = vpack.c.bf16 %v123_v23, %v123_v23 }
  0x9e   :  { %201 = vmatmul.bf16.vlgmr.msra.gmra.mxu1 %v124_v24 }
  0x9f   :  { %v121_v25 = vpop.f32.mrf.mxu0 }
 0x11b   :  { %v202_v29 = vpop.f32.mrf.mxu1 }
 0x11c   :  { %v203_v30 = vadd.f32 %v412_v28, %v202_v29 }
 0x11e   :  { %v206_v31 = vmax.f32 %v203_v30, 0.0 }
 0x120   :  { %v207_v32 = vpack.c.bf16 %v206_v31, %v206_v31 }
 0x122   :  { %284 = vmatmul.bf16.vlgmr.msra.gmra.mxu2 %v207_v32 }
 0x123   :  { %v204_v33 = vpop.f32.mrf.mxu1 }
 0x1a5   :  { %v285_v35 = vpop.f32.mrf.mxu2 }
 0x1a6   :  { %v286_v36 = vadd.f32 %v413_v34, %v285_v35 }
 0x1a8   :  { %414 = vtanh.f32 %v286_v36 }
 0x1ad   :  { %v287_v37 = vpop.f32.mrf.mxu2 }
 0x1ae   :  { %v415_v38 = vpop.eup %414 }
 0x1af   :  { %v292_v39 = vmul.f32 6.0, %v415_v38 }
 0x1b1   :  { %v293_v40 = vadd.f32 -4.0, %v292_v39 }
 0x1b3   :  { %v294_v42 = vmul.f32 1.442695, %v293_v40 }
 0x1b5   :  { %416 = vpow2.f32 %v294_v42 }
 0x1bb   :  { %v417_v44 = vpop.eup %416 }
 0x1bc   :  { %v297_v45 = vsel %vm296_vm2, %v417_v44, %v286_v36 }
 0x1bd   :  { %298 = vst [vmem:[#allocation10] sm:$0xff] %v297_v45 }
 0x1be   :  { %309 = dma.vmem_to_hbm [thread:$0]  %s305_s24, 128, %s307_s27, [#allocation4]  }
 0x1bf   :  { %544 = dma.done.wait [#allocation4], 128  }
 0x1c0   :  { %545 = vsyncadd [#allocation4], 4294967168 }
 0x1c1   :  { %314 = vsyncpa [#allocation3], 1 }
 0x1c2   :  { %315 = vsyncpa [#allocation6], 1 }
 0x1c3   :  { %316 = vsyncpa [#allocation9], 1 }
 0x1c4   :  { %317 = vsyncpa [#allocation4], 1 }

</bundles_post_ra>
